<compile_context>
chip_gen: v7x
topology: tpu7x:2x2x1
jax: 0.10.0
libtpu: 0.0.40
codegen_flags: <defaults>
</compile_context>

<pallas_src>
import jax
import jax.numpy as jnp
from jax.experimental import pallas as pl
from jax.experimental.pallas import tpu as pltpu

DIMS = [214, 256, 256, 128, 64, 4]
K_PAD = 256      # input features padded 214 -> 256
H4_PAD = 128     # fc4 output padded 64 -> 128 (lane-dense intermediate)
OUT_PAD = 128    # final output padded 4 -> 128 (lane-dense stores)


def _round_up(x, m):
    return (x + m - 1) // m * m


def mlp_kernel(x_ref,
               w1_ref, b1_ref,
               w2_ref, b2_ref,
               w3_ref, b3_ref,
               w4_ref, b4_ref,
               w5_ref, b5_ref,
               o_ref):
    # x tile arrives in f32; cast to bf16 only for the MXU, accumulate in f32,
    # keep bias add + ReLU in f32.
    h = x_ref[...]

    def layer(h_f32, w_ref, b_ref, relu):
        acc = jnp.dot(h_f32.astype(jnp.bfloat16), w_ref[...],
                      preferred_element_type=jnp.float32)
        acc = acc + b_ref[...]
        if relu:
            acc = jnp.maximum(acc, 0.0)
        return acc

    h = layer(h, w1_ref, b1_ref, True)   # fc1 + ReLU   (dropout = identity)
    h = layer(h, w2_ref, b2_ref, True)   # fc2 + ReLU   (dropout = identity)
    h = layer(h, w3_ref, b3_ref, True)   # fc3 + ReLU   (dropout = identity)
    h = layer(h, w4_ref, b4_ref, True)   # fc4 + ReLU   (padded cols stay 0)
    h = layer(h, w5_ref, b5_ref, False)  # fc5 (no activation)
    o_ref[...] = h.astype(o_ref.dtype)


def mlp_forward(x, params, *, tile_b=512):
    """x: [B, 214] float32.  params: list of (w [in, out] f32, b [1, out] f32)."""
    B, F = x.shape
    assert F == DIMS[0]

    (w1, b1), (w2, b2), (w3, b3), (w4, b4), (w5, b5) = params

    # ---- layout plumbing in HBM (done once, numerically neutral) ----
    x_p = jnp.pad(x, ((0, 0), (0, K_PAD - F)))                         # 214 -> 256 feature pad
    w1_p = jnp.pad(w1, ((0, K_PAD - F), (0, 0)))                       # zero rows for padded K
    w4_p = jnp.pad(w4, ((0, 0), (0, H4_PAD - DIMS[4])))                # 64 -> 128 out pad
    b4_p = jnp.pad(b4, ((0, 0), (0, H4_PAD - DIMS[4])))
    w5_p = jnp.pad(w5, ((0, H4_PAD - DIMS[4]), (0, OUT_PAD - DIMS[5])))  # rows 64->128, cols 4->128
    b5_p = jnp.pad(b5, ((0, 0), (0, OUT_PAD - DIMS[5])))

    ws = [w.astype(jnp.bfloat16) for w in (w1_p, w2, w3, w4_p, w5_p)]  # bf16 MXU operands
    bs = [b.astype(jnp.float32) for b in (b1, b2, b3, b4_p, b5_p)]     # f32 bias adds

    # ---- batch tiling (TILE_B sized for ~1 MiB of streamed x per buffer; safe on 64 MiB VMEM) ----
    tile_b = min(tile_b, max(8, _round_up(B, 8)))
    b_pad = _round_up(B, tile_b)
    if b_pad != B:
        x_p = jnp.pad(x_p, ((0, b_pad - B), (0, 0)))
    grid = (b_pad // tile_b,)

    flat = []
    for w, b in zip(ws, bs):
        flat.extend([w, b])

    x_spec = pl.BlockSpec((tile_b, K_PAD), lambda i: (i, 0))
    # Constant block index -> weights/biases DMA'd once and stay resident in VMEM.
    resident = lambda arr: pl.BlockSpec(arr.shape, lambda i: (0, 0))
    in_specs = [x_spec] + [resident(a) for a in flat]
    out_spec = pl.BlockSpec((tile_b, OUT_PAD), lambda i: (i, 0))

    flops = 2 * b_pad * sum(DIMS[i] * DIMS[i + 1] for i in range(len(DIMS) - 1))
    bytes_accessed = (x_p.size * x_p.dtype.itemsize
                      + sum(a.size * a.dtype.itemsize for a in flat)
                      + b_pad * OUT_PAD * 4)

    out = pl.pallas_call(
        mlp_kernel,
        out_shape=jax.ShapeDtypeStruct((b_pad, OUT_PAD), jnp.float32),
        grid=grid,
        in_specs=in_specs,
        out_specs=out_spec,
        compiler_params=pltpu.CompilerParams(
            dimension_semantics=("parallel",),      # v7x: shard batch tiles across both TCs
            vmem_limit_bytes=32 * 1024 * 1024,      # valid on v5e/v6e/v7x
        ),
        cost_estimate=pl.CostEstimate(
            flops=flops, transcendentals=0, bytes_accessed=bytes_accessed),
    )(x_p, *flat)

    return out[:B, :DIMS[-1]]


def init_params(key):
    """Deterministic init mimicking nn.Linear default (uniform +/- 1/sqrt(fan_in))."""
    params = []
    for i in range(len(DIMS) - 1):
        fan_in, fan_out = DIMS[i], DIMS[i + 1]
        key, kw, kb = jax.random.split(key, 3)
        bound = 1.0 / jnp.sqrt(fan_in)
        w = jax.random.uniform(kw, (fan_in, fan_out), jnp.float32, -bound, bound)
        b = jax.random.uniform(kb, (1, fan_out), jnp.float32, -bound, bound)
        params.append((w, b))
    return params


def reference_forward(x, params):
    h = x
    for i, (w, b) in enumerate(params):
        h = h @ w + b
        if i < len(params) - 1:
            h = jnp.maximum(h, 0.0)
    return h


if __name__ == "__main__":
    key = jax.random.PRNGKey(0)
    key, kx1, kx2 = jax.random.split(key, 3)
    params = init_params(key)

    # Small, aligned batch.
    B1 = 8
    x1 = jax.random.normal(kx1, (B1, DIMS[0]), jnp.float32)
    out1 = jax.block_until_ready(mlp_forward(x1, params))
    ref1 = reference_forward(x1, params)
    assert out1.shape == (B1, 4), out1.shape
    assert jnp.allclose(out1, ref1, atol=1e-2, rtol=1e-2), "mismatch vs JAX reference (B=8)"

    # Ragged batch (exercises the batch-padding path).
    B2 = 37
    x2 = jax.random.normal(kx2, (B2, DIMS[0]), jnp.float32)
    out2 = jax.block_until_ready(mlp_forward(x2, params))
    ref2 = reference_forward(x2, params)
    assert out2.shape == (B2, 4), out2.shape
    assert jnp.allclose(out2, ref2, atol=1e-2, rtol=1e-2), "mismatch vs JAX reference (B=37)"

    print("KERNEL_OK")
</pallas_src>

<mosaic_0001>
module attributes {stable_mosaic.version = 11 : i64} {
  func.func @mlp_kernel(%arg0: i32, %arg1: memref<8x256xf32, #tpu.memory_space<vmem>>, %arg2: memref<256x256xbf16, #tpu.memory_space<vmem>>, %arg3: memref<1x256xf32, #tpu.memory_space<vmem>>, %arg4: memref<256x256xbf16, #tpu.memory_space<vmem>>, %arg5: memref<1x256xf32, #tpu.memory_space<vmem>>, %arg6: memref<256x128xbf16, #tpu.memory_space<vmem>>, %arg7: memref<1x128xf32, #tpu.memory_space<vmem>>, %arg8: memref<128x128xbf16, #tpu.memory_space<vmem>>, %arg9: memref<1x128xf32, #tpu.memory_space<vmem>>, %arg10: memref<128x128xbf16, #tpu.memory_space<vmem>>, %arg11: memref<1x128xf32, #tpu.memory_space<vmem>>, %arg12: memref<8x128xf32, #tpu.memory_space<vmem>>) attributes {dimension_semantics = [#tpu.dimension_semantics<parallel>], iteration_bounds = array<i64: 1>, scalar_prefetch = 0 : i64, scratch_operands = 0 : i64, tpu.core_type = #tpu.core_type<tc>, window_params = [{transform_indices = @transform_0, window_bounds = array<i64: 8, 256>}, {pipeline_mode = #tpu.pipeline_mode<synchronous>, transform_indices = @transform_1, window_bounds = array<i64: 256, 256>}, {pipeline_mode = #tpu.pipeline_mode<synchronous>, transform_indices = @transform_2, window_bounds = array<i64: 1, 256>}, {pipeline_mode = #tpu.pipeline_mode<synchronous>, transform_indices = @transform_3, window_bounds = array<i64: 256, 256>}, {pipeline_mode = #tpu.pipeline_mode<synchronous>, transform_indices = @transform_4, window_bounds = array<i64: 1, 256>}, {pipeline_mode = #tpu.pipeline_mode<synchronous>, transform_indices = @transform_5, window_bounds = array<i64: 256, 128>}, {pipeline_mode = #tpu.pipeline_mode<synchronous>, transform_indices = @transform_6, window_bounds = array<i64: 1, 128>}, {pipeline_mode = #tpu.pipeline_mode<synchronous>, transform_indices = @transform_7, window_bounds = array<i64: 128, 128>}, {pipeline_mode = #tpu.pipeline_mode<synchronous>, transform_indices = @transform_8, window_bounds = array<i64: 1, 128>}, {pipeline_mode = #tpu.pipeline_mode<synchronous>, transform_indices = @transform_9, window_bounds = array<i64: 128, 128>}, {pipeline_mode = #tpu.pipeline_mode<synchronous>, transform_indices = @transform_10, window_bounds = array<i64: 1, 128>}, {transform_indices = @transform_11, window_bounds = array<i64: 8, 128>}]} {
    %c0 = arith.constant 0 : index
    %c0_0 = arith.constant 0 : index
    %0 = vector.load %arg1[%c0, %c0_0] : memref<8x256xf32, #tpu.memory_space<vmem>>, vector<8x256xf32>
    %1 = arith.truncf %0 : vector<8x256xf32> to vector<8x256xbf16>
    %c0_1 = arith.constant 0 : index
    %c0_2 = arith.constant 0 : index
    %2 = vector.load %arg2[%c0_1, %c0_2] : memref<256x256xbf16, #tpu.memory_space<vmem>>, vector<256x256xbf16>
    %cst = arith.constant dense<0.000000e+00> : vector<8x256xf32>
    %3 = tpu.matmul %1, %2, %cst {dimension_numbers = #tpu.dot_dimension_numbers<[1], [0], [0], [1], [0, 0, 1, 1], [], []>} : vector<8x256xbf16>, vector<256x256xbf16>, vector<8x256xf32> -> vector<8x256xf32>
    %c0_3 = arith.constant 0 : index
    %c0_4 = arith.constant 0 : index
    %4 = vector.load %arg3[%c0_3, %c0_4] : memref<1x256xf32, #tpu.memory_space<vmem>>, vector<1x256xf32>
    %5 = vector.broadcast %4 : vector<1x256xf32> to vector<8x256xf32>
    %6 = arith.addf %3, %5 : vector<8x256xf32>
    %cst_5 = arith.constant 0.000000e+00 : f32
    %7 = vector.broadcast %cst_5 : f32 to vector<8x256xf32>
    %8 = arith.maximumf %6, %7 : vector<8x256xf32>
    %9 = arith.truncf %8 : vector<8x256xf32> to vector<8x256xbf16>
    %c0_6 = arith.constant 0 : index
    %c0_7 = arith.constant 0 : index
    %10 = vector.load %arg4[%c0_6, %c0_7] : memref<256x256xbf16, #tpu.memory_space<vmem>>, vector<256x256xbf16>
    %cst_8 = arith.constant dense<0.000000e+00> : vector<8x256xf32>
    %11 = tpu.matmul %9, %10, %cst_8 {dimension_numbers = #tpu.dot_dimension_numbers<[1], [0], [0], [1], [0, 0, 1, 1], [], []>} : vector<8x256xbf16>, vector<256x256xbf16>, vector<8x256xf32> -> vector<8x256xf32>
    %c0_9 = arith.constant 0 : index
    %c0_10 = arith.constant 0 : index
    %12 = vector.load %arg5[%c0_9, %c0_10] : memref<1x256xf32, #tpu.memory_space<vmem>>, vector<1x256xf32>
    %13 = vector.broadcast %12 : vector<1x256xf32> to vector<8x256xf32>
    %14 = arith.addf %11, %13 : vector<8x256xf32>
    %cst_11 = arith.constant 0.000000e+00 : f32
    %15 = vector.broadcast %cst_11 : f32 to vector<8x256xf32>
    %16 = arith.maximumf %14, %15 : vector<8x256xf32>
    %17 = arith.truncf %16 : vector<8x256xf32> to vector<8x256xbf16>
    %c0_12 = arith.constant 0 : index
    %c0_13 = arith.constant 0 : index
    %18 = vector.load %arg6[%c0_12, %c0_13] : memref<256x128xbf16, #tpu.memory_space<vmem>>, vector<256x128xbf16>
    %cst_14 = arith.constant dense<0.000000e+00> : vector<8x128xf32>
    %19 = tpu.matmul %17, %18, %cst_14 {dimension_numbers = #tpu.dot_dimension_numbers<[1], [0], [0], [1], [0, 0, 1, 1], [], []>} : vector<8x256xbf16>, vector<256x128xbf16>, vector<8x128xf32> -> vector<8x128xf32>
    %c0_15 = arith.constant 0 : index
    %c0_16 = arith.constant 0 : index
    %20 = vector.load %arg7[%c0_15, %c0_16] : memref<1x128xf32, #tpu.memory_space<vmem>>, vector<1x128xf32>
    %21 = vector.broadcast %20 : vector<1x128xf32> to vector<8x128xf32>
    %22 = arith.addf %19, %21 : vector<8x128xf32>
    %cst_17 = arith.constant 0.000000e+00 : f32
    %23 = vector.broadcast %cst_17 : f32 to vector<8x128xf32>
    %24 = arith.maximumf %22, %23 : vector<8x128xf32>
    %25 = arith.truncf %24 : vector<8x128xf32> to vector<8x128xbf16>
    %c0_18 = arith.constant 0 : index
    %c0_19 = arith.constant 0 : index
    %26 = vector.load %arg8[%c0_18, %c0_19] : memref<128x128xbf16, #tpu.memory_space<vmem>>, vector<128x128xbf16>
    %cst_20 = arith.constant dense<0.000000e+00> : vector<8x128xf32>
    %27 = tpu.matmul %25, %26, %cst_20 {dimension_numbers = #tpu.dot_dimension_numbers<[1], [0], [0], [1], [0, 0, 1, 1], [], []>} : vector<8x128xbf16>, vector<128x128xbf16>, vector<8x128xf32> -> vector<8x128xf32>
    %c0_21 = arith.constant 0 : index
    %c0_22 = arith.constant 0 : index
    %28 = vector.load %arg9[%c0_21, %c0_22] : memref<1x128xf32, #tpu.memory_space<vmem>>, vector<1x128xf32>
    %29 = vector.broadcast %28 : vector<1x128xf32> to vector<8x128xf32>
    %30 = arith.addf %27, %29 : vector<8x128xf32>
    %cst_23 = arith.constant 0.000000e+00 : f32
    %31 = vector.broadcast %cst_23 : f32 to vector<8x128xf32>
    %32 = arith.maximumf %30, %31 : vector<8x128xf32>
    %33 = arith.truncf %32 : vector<8x128xf32> to vector<8x128xbf16>
    %c0_24 = arith.constant 0 : index
    %c0_25 = arith.constant 0 : index
    %34 = vector.load %arg10[%c0_24, %c0_25] : memref<128x128xbf16, #tpu.memory_space<vmem>>, vector<128x128xbf16>
    %cst_26 = arith.constant dense<0.000000e+00> : vector<8x128xf32>
    %35 = tpu.matmul %33, %34, %cst_26 {dimension_numbers = #tpu.dot_dimension_numbers<[1], [0], [0], [1], [0, 0, 1, 1], [], []>} : vector<8x128xbf16>, vector<128x128xbf16>, vector<8x128xf32> -> vector<8x128xf32>
    %c0_27 = arith.constant 0 : index
    %c0_28 = arith.constant 0 : index
    %36 = vector.load %arg11[%c0_27, %c0_28] : memref<1x128xf32, #tpu.memory_space<vmem>>, vector<1x128xf32>
    %37 = vector.broadcast %36 : vector<1x128xf32> to vector<8x128xf32>
    %38 = arith.addf %35, %37 : vector<8x128xf32>
    %c0_29 = arith.constant 0 : index
    %c0_30 = arith.constant 0 : index
    %39 = vector.load %arg12[%c0_29, %c0_30] : memref<8x128xf32, #tpu.memory_space<vmem>>, vector<8x128xf32>
    tpu.vector_store %arg12[%c0_29, %c0_30], %38 {strides = array<i32>} : memref<8x128xf32, #tpu.memory_space<vmem>>, vector<8x128xf32>,
    return
  }
  func.func @transform_0(%arg0: i32) -> (i32, i32) {
    %c0_i32 = arith.constant 0 : i32
    %c0_i32_0 = arith.constant 0 : i32
    return %arg0, %c0_i32 : i32, i32
  }
  func.func @transform_1(%arg0: i32) -> (i32, i32) {
    %c0_i32 = arith.constant 0 : i32
    %c0_i32_0 = arith.constant 0 : i32
    %c0_i32_1 = arith.constant 0 : i32
    return %c0_i32, %c0_i32_0 : i32, i32
  }
  func.func @transform_2(%arg0: i32) -> (i32, i32) {
    %c0_i32 = arith.constant 0 : i32
    %c0_i32_0 = arith.constant 0 : i32
    %c0_i32_1 = arith.constant 0 : i32
    return %c0_i32, %c0_i32_0 : i32, i32
  }
  func.func @transform_3(%arg0: i32) -> (i32, i32) {
    %c0_i32 = arith.constant 0 : i32
    %c0_i32_0 = arith.constant 0 : i32
    %c0_i32_1 = arith.constant 0 : i32
    return %c0_i32, %c0_i32_0 : i32, i32
  }
  func.func @transform_4(%arg0: i32) -> (i32, i32) {
    %c0_i32 = arith.constant 0 : i32
    %c0_i32_0 = arith.constant 0 : i32
    %c0_i32_1 = arith.constant 0 : i32
    return %c0_i32, %c0_i32_0 : i32, i32
  }
  func.func @transform_5(%arg0: i32) -> (i32, i32) {
    %c0_i32 = arith.constant 0 : i32
    %c0_i32_0 = arith.constant 0 : i32
    %c0_i32_1 = arith.constant 0 : i32
    return %c0_i32, %c0_i32_0 : i32, i32
  }
  func.func @transform_6(%arg0: i32) -> (i32, i32) {
    %c0_i32 = arith.constant 0 : i32
    %c0_i32_0 = arith.constant 0 : i32
    %c0_i32_1 = arith.constant 0 : i32
    return %c0_i32, %c0_i32_0 : i32, i32
  }
  func.func @transform_7(%arg0: i32) -> (i32, i32) {
    %c0_i32 = arith.constant 0 : i32
    %c0_i32_0 = arith.constant 0 : i32
    %c0_i32_1 = arith.constant 0 : i32
    return %c0_i32, %c0_i32_0 : i32, i32
  }
  func.func @transform_8(%arg0: i32) -> (i32, i32) {
    %c0_i32 = arith.constant 0 : i32
    %c0_i32_0 = arith.constant 0 : i32
    %c0_i32_1 = arith.constant 0 : i32
    return %c0_i32, %c0_i32_0 : i32, i32
  }
  func.func @transform_9(%arg0: i32) -> (i32, i32) {
    %c0_i32 = arith.constant 0 : i32
    %c0_i32_0 = arith.constant 0 : i32
    %c0_i32_1 = arith.constant 0 : i32
    return %c0_i32, %c0_i32_0 : i32, i32
  }
  func.func @transform_10(%arg0: i32) -> (i32, i32) {
    %c0_i32 = arith.constant 0 : i32
    %c0_i32_0 = arith.constant 0 : i32
    %c0_i32_1 = arith.constant 0 : i32
    return %c0_i32, %c0_i32_0 : i32, i32
  }
  func.func @transform_11(%arg0: i32) -> (i32, i32) {
    %c0_i32 = arith.constant 0 : i32
    %c0_i32_0 = arith.constant 0 : i32
    return %arg0, %c0_i32 : i32, i32
  }
}

</mosaic_0001>

<bundles_post_ra>
// kernel: tpu_custom_call.1
= control target key start
LH: loop header
LB: loop body
LE: loop exit
PB: predicated region body
PF: predicated region fallthrough
CT: control target
= control target key end

     0   :  { %16 = vsyncpa [#allocation3], 0  ;;  %s1745_s0 = inlined_call_operand.hbm [shape: f32[8,256], index: 0, kind: input, shape index: {}]   ;;  %s1746_s1 = inlined_call_operand.hbm [shape: bf16[256,256], index: 1, kind: input, shape index: {}]   ;;  %s1747_s2 = inlined_call_operand.vmem [shape: f32[1,256], index: 2, kind: input, shape index: {}]   ;;  %s1748_s3 = inlined_call_operand.hbm [shape: bf16[256,256], index: 3, kind: input, shape index: {}]   ;;  %s1749_s4 = inlined_call_operand.vmem [shape: f32[1,256], index: 4, kind: input, shape index: {}]   ;;  %s1750_s5 = inlined_call_operand.hbm [shape: bf16[256,128], index: 5, kind: input, shape index: {}]   ;;  %s1751_s6 = inlined_call_operand.vmem [shape: f32[1,128], index: 6, kind: input, shape index: {}]   ;;  %s1752_s7 = inlined_call_operand.hbm [shape: bf16[128,128], index: 7, kind: input, shape index: {}]   ;;  %s1753_s8 = inlined_call_operand.vmem [shape: f32[1,128], index: 8, kind: input, shape index: {}]   ;;  %s1754_s9 = inlined_call_operand.hbm [shape: bf16[128,128], index: 9, kind: input, shape index: {}]   ;;  %s1755_s10 = inlined_call_operand.vmem [shape: f32[1,128], index: 10, kind: input, shape index: {}]   ;;  %s1756_s11 = inlined_call_operand.hbm [shape: f32[8,128], index: 11, kind: output, shape index: {}]  }
   0x1   :  { %17 = vsyncpa [#allocation6], 0 }
   0x2   :  { %18 = vsyncpa [#allocation9], 0 }
   0x3   :  { %19 = vsyncpa [#allocation12], 0 }
   0x4   :  { %20 = vsyncpa [#allocation4], 0  ;;  %s1526_s17 = smov [#allocation5]   ;;  %s1362_s21 = scalar_lea.hbm %s1746_s1, 4096 }
   0x5   :  { %s36_s18 = sshll.u32 %s1526_s17, 4  ;;  %p1363_p0 = scmp.ne.s32.totalorder %s1746_s1, %s1362_s21  ;;  %s37_s18 = int_to_ptr.vmem [resolvable:$true] %s36_s18 }
   0x6   :  { %p1366_p1 = scmp.lt.u32.totalorder %s1362_s21, %s1746_s1 }
   0x8   :  { %p1368_p2 = pnand %p1366_p1, %p1363_p0 }
   0xa   :  { %1371 = shalt.err (!%p1368_p2)
}
   0xb   :  { %s1372_s26 = scalar_lea.vmem %s37_s18, 4096  ;;  %p1377_p4 = scmp.lt.s32.totalorder %s37_s18, %s37_s18 }
   0xc   :  { %p1373_p3 = scmp.ne.s32.totalorder %s37_s18, %s1372_s26  ;;  %p1378_p5 = scmp.lt.s32.totalorder %s1372_s26, %s1372_s26 }
   0xe   :  { %p1379_p6 = por %p1378_p5, %p1377_p4 }
  0x10   :  { %p1380_p7 = pnand %p1379_p6, %p1373_p3 }
  0x12   :  { %1383 = shalt.err (!%p1380_p7)
}
  0x13   :  { %s1527_s27 = smov 128   ;;  %s1528_s28 = smov 8  }
  0x14   :  { %42 = dma.hbm_to_vmem [thread:$0]  %s1746_s1, 4096, %s37_s18, [#allocation6], %s1527_s27, %s1527_s27, %s1528_s28  }
  0x15   :  { %s1529_s12 = smov [#allocation8]   ;;  %s1384_s16 = scalar_lea.hbm %s1750_s5, 2048 }
  0x16   :  { %s64_s13 = sshll.u32 %s1529_s12, 4  ;;  %p1385_p8 = scmp.ne.s32.totalorder %s1750_s5, %s1384_s16  ;;  %s65_s13 = int_to_ptr.vmem [resolvable:$true] %s64_s13 }
  0x17   :  { %p1388_p9 = scmp.lt.u32.totalorder %s1384_s16, %s1750_s5 }
  0x19   :  { %p1390_p10 = pnand %p1388_p9, %p1385_p8 }
  0x1b   :  { %1393 = shalt.err (!%p1390_p10)
}
  0x1c   :  { %s1394_s22 = scalar_lea.vmem %s65_s13, 2048  ;;  %p1399_p12 = scmp.lt.s32.totalorder %s65_s13, %s65_s13 }
  0x1d   :  { %p1395_p11 = scmp.ne.s32.totalorder %s65_s13, %s1394_s22  ;;  %p1400_p13 = scmp.lt.s32.totalorder %s1394_s22, %s1394_s22 }
  0x1f   :  { %p1401_p0 = por %p1400_p13, %p1399_p12 }
  0x21   :  { %p1402_p1 = pnand %p1401_p0, %p1395_p11 }
  0x23   :  { %1405 = shalt.err (!%p1402_p1)
}
  0x24   :  { %s1530_s1 = smov 64   ;;  %s1531_s18 = smov 4  }
  0x25   :  { %70 = dma.hbm_to_vmem [thread:$0]  %s1750_s5, 2048, %s65_s13, [#allocation9], %s1530_s1, %s1530_s1, %s1531_s18  }
  0x26   :  { %s1532_s25 = smov [#allocation2]   ;;  %s1533_s29 = smov [#allocation7]  }
  0x27   :  { %s27_s26 = sshll.u32 %s1532_s25, 4  ;;  %s50_s30 = sshll.u32 %s1533_s29, 4  ;;  %s28_s26 = int_to_ptr.vmem [resolvable:$true] %s27_s26  ;;  %s1629_s30 = int_to_ptr.vmem [resolvable:$true] %s50_s30 }
  0x28   :  { %s1406_s15 = scalar_lea.hbm %s1745_s0, 256 }
  0x29   :  { %p1407_p2 = scmp.ne.s32.totalorder %s1745_s0, %s1406_s15  ;;  %p1410_p3 = scmp.lt.u32.totalorder %s1406_s15, %s1745_s0 }
  0x2b   :  { %p1412_p4 = pnand %p1410_p3, %p1407_p2 }
  0x2d   :  { %1415 = shalt.err (!%p1412_p4)
}
  0x2e   :  { %s1416_s5 = scalar_lea.vmem %s28_s26, 256  ;;  %p1421_p6 = scmp.lt.s32.totalorder %s28_s26, %s28_s26 }
  0x2f   :  { %p1417_p5 = scmp.ne.s32.totalorder %s28_s26, %s1416_s5  ;;  %p1422_p7 = scmp.lt.s32.totalorder %s1416_s5, %s1416_s5 }
  0x31   :  { %p1423_p8 = por %p1422_p7, %p1421_p6 }
  0x33   :  { %p1424_p9 = pnand %p1423_p8, %p1417_p5 }
  0x35   :  { %1427 = shalt.err (!%p1424_p9)
}
  0x36   :  { %30 = dma.hbm_to_vmem [thread:$0]  %s1745_s0, 256, %s28_s26, [#allocation3]  }
  0x37   :  { %s1428_s24 = scalar_lea.hbm %s1748_s3, 4096 }
  0x38   :  { %p1429_p10 = scmp.ne.s32.totalorder %s1748_s3, %s1428_s24  ;;  %p1432_p11 = scmp.lt.u32.totalorder %s1428_s24, %s1748_s3 }
  0x3a   :  { %p1434_p12 = pnand %p1432_p11, %p1429_p10 }
  0x3c   :  { %1437 = shalt.err (!%p1434_p12)
}
  0x3d   :  { %s1438_s15 = scalar_lea.vmem %s1629_s30, 4096  ;;  %p1443_p0 = scmp.lt.s32.totalorder %s1629_s30, %s1629_s30 }
  0x3e   :  { %p1439_p13 = scmp.ne.s32.totalorder %s1629_s30, %s1438_s15  ;;  %p1444_p1 = scmp.lt.s32.totalorder %s1438_s15, %s1438_s15 }
  0x40   :  { %p1445_p2 = por %p1444_p1, %p1443_p0 }
  0x42   :  { %p1446_p3 = pnand %p1445_p2, %p1439_p13 }
  0x44   :  { %1449 = shalt.err (!%p1446_p3)
}
  0x45   :  { %56 = dma.hbm_to_vmem [thread:$0]  %s1748_s3, 4096, %s1629_s30, [#allocation6], %s1527_s27, %s1527_s27, %s1528_s28  }
  0x46   :  { %s1534_s16 = smov [#allocation10]   ;;  %s1535_s19 = smov [#allocation11]  }
  0x47   :  { %s78_s17 = sshll.u32 %s1534_s16, 4  ;;  %s92_s20 = sshll.u32 %s1535_s19, 4  ;;  %s79_s17 = int_to_ptr.vmem [resolvable:$true] %s78_s17  ;;  %s1663_s20 = int_to_ptr.vmem [resolvable:$true] %s92_s20 }
  0x48   :  { %s1450_s21 = scalar_lea.hbm %s1752_s7, 1024 }
  0x49   :  { %p1451_p4 = scmp.ne.s32.totalorder %s1752_s7, %s1450_s21  ;;  %p1454_p5 = scmp.lt.u32.totalorder %s1450_s21, %s1752_s7 }
  0x4b   :  { %p1456_p6 = pnand %p1454_p5, %p1451_p4 }
  0x4d   :  { %1459 = shalt.err (!%p1456_p6)
}
  0x4e   :  { %s1460_s3 = scalar_lea.vmem %s79_s17, 1024  ;;  %p1465_p8 = scmp.lt.s32.totalorder %s79_s17, %s79_s17 }
  0x4f   :  { %p1461_p7 = scmp.ne.s32.totalorder %s79_s17, %s1460_s3  ;;  %p1466_p9 = scmp.lt.s32.totalorder %s1460_s3, %s1460_s3 }
  0x51   :  { %p1467_p10 = por %p1466_p9, %p1465_p8 }
  0x53   :  { %p1468_p11 = pnand %p1467_p10, %p1461_p7 }
  0x55   :  { %1471 = shalt.err (!%p1468_p11)
}
  0x56   :  { %84 = dma.hbm_to_vmem [thread:$0]  %s1752_s7, 1024, %s79_s17, [#allocation9], %s1530_s1, %s1530_s1, %s1531_s18  }
  0x57   :  { %s1472_s12 = scalar_lea.hbm %s1754_s9, 1024 }
  0x58   :  { %p1473_p12 = scmp.ne.s32.totalorder %s1754_s9, %s1472_s12  ;;  %p1476_p13 = scmp.lt.u32.totalorder %s1472_s12, %s1754_s9 }
  0x5a   :  { %p1478_p0 = pnand %p1476_p13, %p1473_p12 }
  0x5c   :  { %1481 = shalt.err (!%p1478_p0)
}
  0x5d   :  { %s1482_s16 = scalar_lea.vmem %s1663_s20, 1024  ;;  %p1487_p2 = scmp.lt.s32.totalorder %s1663_s20, %s1663_s20 }
  0x5e   :  { %p1483_p1 = scmp.ne.s32.totalorder %s1663_s20, %s1482_s16  ;;  %p1488_p3 = scmp.lt.s32.totalorder %s1482_s16, %s1482_s16 }
  0x60   :  { %p1489_p4 = por %p1488_p3, %p1487_p2 }
  0x62   :  { %p1490_p5 = pnand %p1489_p4, %p1483_p1 }
  0x64   :  { %1493 = shalt.err (!%p1490_p5)
}
  0x65   :  { %98 = dma.hbm_to_vmem [thread:$0]  %s1754_s9, 1024, %s1663_s20, [#allocation12], %s1530_s1, %s1530_s1, %s1531_s18  }
  0x66   :  { %1516 = dma.done.wait [#allocation3], 256  }
  0x67   :  { %1517 = vsyncadd [#allocation3], 4294967040 }
  0x68   :  { %1518 = dma.done.wait [#allocation6], 8192  }
  0x69   :  { %1519 = vsyncadd [#allocation6], 4294959104 }
  0x6a   :  { %1520 = dma.done.wait [#allocation9], 3072  }
  0x6b   :  { %1521 = vsyncadd [#allocation9], 4294964224 }
  0x6c   :  { %1522 = dma.done.wait [#allocation12], 1024  }
  0x6d   :  { %1523 = vsyncadd [#allocation12], 4294966272  ;;  %v1234_v0 = vld [vmem:[#allocation5 + $0x4] ss:$8 sps:$4 sm:$0xff]   ;;  %v1236_v1 = vld [vmem:[#allocation5] ss:$8 sps:$4 sm:$0xff]  }
  0x6e   :  { %328 = vmatprep.subr.bf16.mxu0 %v1234_v0  ;;  %v1237_v2 = vld [vmem:[#allocation5 + $0x14] ss:$8 sps:$4 sm:$0xff]   ;;  %v1239_v3 = vld [vmem:[#allocation5 + $0x10] ss:$8 sps:$4 sm:$0xff]   ;;  %v1240_v4 = vld [vmem:[#allocation5 + $0x24] ss:$8 sps:$4 sm:$0xff]  }
  0x6f   :  { %329 = vmatpush1.bf16.msra.mxu0 %v1236_v1  ;;  %v1242_v5 = vld [vmem:[#allocation5 + $0x20] ss:$8 sps:$4 sm:$0xff]   ;;  %v1243_v6 = vld [vmem:[#allocation5 + $0x34] ss:$8 sps:$4 sm:$0xff]   ;;  %v1245_v7 = vld [vmem:[#allocation5 + $0x30] ss:$8 sps:$4 sm:$0xff]  }
  0x70   :  { %330 = vmatprep.subr.bf16.mxu0 %v1237_v2  ;;  %v1246_v8 = vld [vmem:[#allocation5 + $0x44] ss:$8 sps:$4 sm:$0xff]   ;;  %v1248_v9 = vld [vmem:[#allocation5 + $0x40] ss:$8 sps:$4 sm:$0xff]   ;;  %v1249_v10 = vld [vmem:[#allocation5 + $0x54] ss:$8 sps:$4 sm:$0xff]  }
  0x71   :  { %v1251_v11 = vld [vmem:[#allocation5 + $0x50] ss:$8 sps:$4 sm:$0xff]   ;;  %v1252_v12 = vld [vmem:[#allocation5 + $0x64] ss:$8 sps:$4 sm:$0xff]   ;;  %v1254_v13 = vld [vmem:[#allocation5 + $0x60] ss:$8 sps:$4 sm:$0xff]  }
  0x72   :  { %v121_v14 = vld [vmem:[#allocation2 + $0x8] sm:$0xff]  ;;  %v1282_v16 = vld [vmem:[#allocation7 + $0x4] ss:$8 sps:$4 sm:$0xff]   ;;  %v1284_v17 = vld [vmem:[#allocation7] ss:$8 sps:$4 sm:$0xff]   ;;  %vm1537_vm0 = vmmov 0  }
  0x73   :  { %331 = vmatpush1.bf16.msra.mxu0 %v1239_v3  ;;  %v123_v15 = vpack.c.bf16 %v121_v14, %v121_v14  ;;  %v1255_v18 = vld [vmem:[#allocation5 + $0x74] ss:$8 sps:$4 sm:$0xff]   ;;  %v1257_v20 = vld [vmem:[#allocation5 + $0x70] ss:$8 sps:$4 sm:$0xff]   ;;  %577 = vmatprep.subr.bf16.mxu1 %v1282_v16  ;;  %v1288_v22 = vld [vmem:[#allocation7 + $0x24] ss:$8 sps:$4 sm:$0xff]   ;;  %v158_v16 = vlaneseq }
  0x74   :  { %332 = vmatprep.subr.bf16.mxu0 %v1240_v4  ;;  %v1285_v19 = vld [vmem:[#allocation7 + $0x14] ss:$8 sps:$4 sm:$0xff]   ;;  %578 = vmatpush1.bf16.msra.mxu1 %v1284_v17  ;;  %v1287_v21 = vld [vmem:[#allocation7 + $0x10] ss:$8 sps:$4 sm:$0xff]   ;;  %v1258_v23 = vld [vmem:[#allocation5 + $0x84] ss:$8 sps:$4 sm:$0xff]  }
  0x75   :  { %360 = vmatprep.mubr.bf16.mxu0 %v123_v15  ;;  %579 = vmatprep.subr.bf16.mxu1 %v1285_v19  ;;  %v1260_v24 = vld [vmem:[#allocation5 + $0x80] ss:$8 sps:$4 sm:$0xff]   ;;  %v1291_v26 = vld [vmem:[#allocation7 + $0x34] ss:$8 sps:$4 sm:$0xff]   ;;  %v1263_v28 = vld [vmem:[#allocation5 + $0x90] ss:$8 sps:$4 sm:$0xff]  }
  0x76   :  { %v1290_v25 = vld [vmem:[#allocation7 + $0x20] ss:$8 sps:$4 sm:$0xff]   ;;  %v1261_v27 = vld [vmem:[#allocation5 + $0x94] ss:$8 sps:$4 sm:$0xff]   ;;  %v1293_v29 = vld [vmem:[#allocation7 + $0x30] ss:$8 sps:$4 sm:$0xff]  }
  0x77   :  { %333 = vmatpush1.bf16.msra.mxu0 %v1242_v5  ;;  %v1294_v30 = vld [vmem:[#allocation7 + $0x44] ss:$8 sps:$4 sm:$0xff]   ;;  %v1266_v32 = vld [vmem:[#allocation5 + $0xa0] ss:$8 sps:$4 sm:$0xff]   ;;  %v1297_v34 = vld [vmem:[#allocation7 + $0x54] ss:$8 sps:$4 sm:$0xff]  }
  0x78   :  { %334 = vmatprep.subr.bf16.mxu0 %v1243_v6  ;;  %580 = vmatpush1.bf16.msra.mxu1 %v1287_v21  ;;  %v1264_v31 = vld [vmem:[#allocation5 + $0xa4] ss:$8 sps:$4 sm:$0xff]   ;;  %v1296_v33 = vld [vmem:[#allocation7 + $0x40] ss:$8 sps:$4 sm:$0xff]   ;;  %v1267_v35 = vld [vmem:[#allocation5 + $0xb4] ss:$8 sps:$4 sm:$0xff]  }
  0x79   :  { %581 = vmatprep.subr.bf16.mxu1 %v1288_v22  ;;  %v1299_v36 = vld [vmem:[#allocation7 + $0x50] ss:$8 sps:$4 sm:$0xff]   ;;  %v1300_v38 = vld [vmem:[#allocation7 + $0x64] ss:$8 sps:$4 sm:$0xff]   ;;  %v1302_v40 = vld [vmem:[#allocation7 + $0x60] ss:$8 sps:$4 sm:$0xff]  }
  0x7a   :  { %v1269_v37 = vld [vmem:[#allocation5 + $0xb0] ss:$8 sps:$4 sm:$0xff]   ;;  %v1270_v39 = vld [vmem:[#allocation5 + $0xc4] ss:$8 sps:$4 sm:$0xff]   ;;  %v1272_v41 = vld [vmem:[#allocation5 + $0xc0] ss:$8 sps:$4 sm:$0xff]  }
  0x7b   :  { %335 = vmatpush1.bf16.msra.mxu0 %v1245_v7  ;;  %v1303_v42 = vld [vmem:[#allocation7 + $0x74] ss:$8 sps:$4 sm:$0xff]   ;;  %v1305_v44 = vld [vmem:[#allocation7 + $0x70] ss:$8 sps:$4 sm:$0xff]   ;;  %v1306_v46 = vld [vmem:[#allocation7 + $0x84] ss:$8 sps:$4 sm:$0xff]  }
  0x7c   :  { %336 = vmatprep.subr.bf16.mxu0 %v1246_v8  ;;  %582 = vmatpush1.bf16.msra.mxu1 %v1290_v25  ;;  %v1273_v43 = vld [vmem:[#allocation5 + $0xd4] ss:$8 sps:$4 sm:$0xff]   ;;  %v1275_v45 = vld [vmem:[#allocation5 + $0xd0] ss:$8 sps:$4 sm:$0xff]   ;;  %v1276_v47 = vld [vmem:[#allocation5 + $0xe4] ss:$8 sps:$4 sm:$0xff]  }
  0x7d   :  { %583 = vmatprep.subr.bf16.mxu1 %v1291_v26  ;;  %v1308_v48 = vld [vmem:[#allocation7 + $0x80] ss:$8 sps:$4 sm:$0xff]   ;;  %v1309_v50 = vld [vmem:[#allocation7 + $0x94] ss:$8 sps:$4 sm:$0xff]   ;;  %v1311_v52 = vld [vmem:[#allocation7 + $0x90] ss:$8 sps:$4 sm:$0xff]  }
  0x7e   :  { %v1278_v49 = vld [vmem:[#allocation5 + $0xe0] ss:$8 sps:$4 sm:$0xff]   ;;  %v1279_v51 = vld [vmem:[#allocation5 + $0xf4] ss:$8 sps:$4 sm:$0xff]   ;;  %v1281_v53 = vld [vmem:[#allocation5 + $0xf0] ss:$8 sps:$4 sm:$0xff]  }
  0x7f   :  { %337 = vmatpush1.bf16.msra.mxu0 %v1248_v9  ;;  %v120_v54 = vld [vmem:[#allocation2] sm:$0xff]  ;;  %v1312_v55 = vld [vmem:[#allocation7 + $0xa4] ss:$8 sps:$4 sm:$0xff]   ;;  %v1314_v56 = vld [vmem:[#allocation7 + $0xa0] ss:$8 sps:$4 sm:$0xff]   ;;  %v159_v17 = vshrl.u32 %v158_v16, 7 }
  0x80   :  { %338 = vmatprep.subr.bf16.mxu0 %v1249_v10  ;;  %584 = vmatpush1.bf16.msra.mxu1 %v1293_v29  ;;  %v122_v57 = vpack.c.bf16 %v120_v54, %v120_v54  ;;  %v1315_v58 = vld [vmem:[#allocation7 + $0xb4] ss:$8 sps:$4 sm:$0xff]   ;;  %v1317_v59 = vld [vmem:[#allocation7 + $0xb0] ss:$8 sps:$4 sm:$0xff]   ;;  %v1318_v60 = vld [vmem:[#allocation7 + $0xc4] ss:$8 sps:$4 sm:$0xff]  }
  0x81   :  { %585 = vmatprep.subr.bf16.mxu1 %v1294_v30  ;;  %v1320_v61 = vld [vmem:[#allocation7 + $0xc0] ss:$8 sps:$4 sm:$0xff]   ;;  %v1321_v62 = vld [vmem:[#allocation7 + $0xd4] ss:$8 sps:$4 sm:$0xff]   ;;  %v1323_v63 = vld [vmem:[#allocation7 + $0xd0] ss:$8 sps:$4 sm:$0xff]  }
  0x82   :  { %v1324_v0 = vld [vmem:[#allocation7 + $0xe4] ss:$8 sps:$4 sm:$0xff]   ;;  %v1326_v1 = vld [vmem:[#allocation7 + $0xe0] ss:$8 sps:$4 sm:$0xff]   ;;  %v1327_v2 = vld [vmem:[#allocation7 + $0xf4] ss:$8 sps:$4 sm:$0xff]  }
  0x83   :  { %339 = vmatpush1.bf16.msra.mxu0 %v1251_v11  ;;  %v1329_v3 = vld [vmem:[#allocation7 + $0xf0] ss:$8 sps:$4 sm:$0xff]   ;;  %v1330_v4 = vld [vmem:[#allocation8 + $0x40] sm:$0xff]   ;;  %v1332_v6 = vld [vmem:[#allocation8 + $0x48] sm:$0xff]   ;;  %s1538_s21 = smov [#allocation13]  }
  0x84   :  { %340 = vmatprep.subr.bf16.mxu0 %v1252_v12  ;;  %586 = vmatpush1.bf16.msra.mxu1 %v1296_v33  ;;  %v1331_v5 = vld [vmem:[#allocation8] sm:$0xff]   ;;  %v1333_v7 = vld [vmem:[#allocation8 + $0x8] sm:$0xff]   ;;  %v1334_v8 = vld [vmem:[#allocation8 + $0x50] sm:$0xff]   ;;  %s1030_s22 = sshll.u32 %s1538_s21, 4  ;;  %s1031_s22 = int_to_ptr.vmem [resolvable:$true] %s1030_s22 }
  0x85   :  { %587 = vmatprep.subr.bf16.mxu1 %v1297_v34  ;;  %v1335_v9 = vld [vmem:[#allocation8 + $0x10] sm:$0xff]   ;;  %v1336_v10 = vld [vmem:[#allocation8 + $0x58] sm:$0xff]   ;;  %v1338_v12 = vld [vmem:[#allocation8 + $0x60] sm:$0xff]   ;;  %p1499_p7 = scmp.lt.s32.totalorder %s1031_s22, %s1031_s22 }
  0x86   :  { %v1337_v11 = vld [vmem:[#allocation8 + $0x18] sm:$0xff]   ;;  %v1340_v14 = vld [vmem:[#allocation8 + $0x68] sm:$0xff]   ;;  %v156_v19 = vld [vmem:[%s1747_s2] sm:$0x3] }
  0x87   :  { %341 = vmatpush1.bf16.msra.mxu0 %v1254_v13  ;;  %v1339_v13 = vld [vmem:[#allocation8 + $0x20] sm:$0xff]   ;;  %v1341_v15 = vld [vmem:[#allocation8 + $0x28] sm:$0xff]   ;;  %v1342_v33 = vld [vmem:[#allocation8 + $0x70] sm:$0xff]  }
  0x88   :  { %342 = vmatprep.subr.bf16.mxu0 %v1255_v18  ;;  %588 = vmatpush1.bf16.msra.mxu1 %v1299_v36  ;;  %v160_v18 = vsub.s32 0, %v159_v17  ;;  %v1343_v34 = vld [vmem:[#allocation8 + $0x30] sm:$0xff]   ;;  %v1345_v36 = vld [vmem:[#allocation8 + $0x38] sm:$0xff]  }
  0x89   :  { %589 = vmatprep.subr.bf16.mxu1 %v1300_v38  ;;  %v1536_v38 = vmov 0.0  }
  0x8a   :  { %v161_v21 = vrot.slane %v156_v19, %v160_v18 }
  0x8b   :  { %343 = vmatpush1.bf16.msra.mxu0 %v1257_v20  ;;  %v164_v20 = vsub.s32 1, %v159_v17 }
  0x8c   :  { %344 = vmatprep.subr.bf16.mxu0 %v1258_v23  ;;  %590 = vmatpush1.bf16.msra.mxu1 %v1302_v40  ;;  %v1348_v40 = vld [vmem:[#allocation10 + $0x10] sm:$0xff]  }
  0x8d   :  { %591 = vmatprep.subr.bf16.mxu1 %v1303_v42  ;;  %v165_v22 = vrot.slane %v156_v19, %v164_v20  ;;  %v1350_v42 = vld [vmem:[#allocation10 + $0x20] sm:$0xff]  }
  0x8f   :  { %345 = vmatpush1.bf16.msra.mxu0 %v1260_v24 }
  0x90   :  { %346 = vmatprep.subr.bf16.mxu0 %v1261_v27  ;;  %592 = vmatpush1.bf16.msra.mxu1 %v1305_v44  ;;  %v405_v44 = vld [vmem:[%s1749_s4] sm:$0x3] }
  0x91   :  { %593 = vmatprep.subr.bf16.mxu1 %v1306_v46  ;;  %v414_v46 = vrot.slane %v405_v44, %v164_v20  ;;  %v1132_v20 = vld [vmem:[%s1755_s10] ss:$0 sm:$0xff] }
  0x93   :  { %347 = vmatpush1.bf16.msra.mxu0 %v1263_v28 }
  0x94   :  { %348 = vmatprep.subr.bf16.mxu0 %v1264_v31  ;;  %594 = vmatpush1.bf16.msra.mxu1 %v1308_v48 }
  0x95   :  { %595 = vmatprep.subr.bf16.mxu1 %v1309_v50 }
  0x97   :  { %349 = vmatpush1.bf16.msra.mxu0 %v1266_v32 }
  0x98   :  { %350 = vmatprep.subr.bf16.mxu0 %v1267_v35  ;;  %596 = vmatpush1.bf16.msra.mxu1 %v1311_v52  ;;  %v1344_v35 = vld [vmem:[#allocation8 + $0x78] sm:$0xff]  }
  0x99   :  { %597 = vmatprep.subr.bf16.mxu1 %v1312_v55 }
  0x9b   :  { %351 = vmatpush1.bf16.msra.mxu0 %v1269_v37  ;;  %v1346_v37 = vld [vmem:[#allocation10] sm:$0xff]  }
  0x9c   :  { %352 = vmatprep.subr.bf16.mxu0 %v1270_v39  ;;  %598 = vmatpush1.bf16.msra.mxu1 %v1314_v56  ;;  %v1347_v39 = vld [vmem:[#allocation10 + $0x8] sm:$0xff]  }
  0x9d   :  { %599 = vmatprep.subr.bf16.mxu1 %v1315_v58  ;;  %v1353_v58 = vld [vmem:[#allocation10 + $0x38] sm:$0xff]  }
  0x9f   :  { %353 = vmatpush1.bf16.msra.mxu0 %v1272_v41  ;;  %v1349_v41 = vld [vmem:[#allocation10 + $0x18] sm:$0xff]  }
  0xa0   :  { %354 = vmatprep.subr.bf16.mxu0 %v1273_v43  ;;  %600 = vmatpush1.bf16.msra.mxu1 %v1317_v59  ;;  %v1351_v43 = vld [vmem:[#allocation10 + $0x28] sm:$0xff]   ;;  %v1354_v59 = vld [vmem:[#allocation11] sm:$0xff]  }
  0xa1   :  { %601 = vmatprep.subr.bf16.mxu1 %v1318_v60  ;;  %v1355_v60 = vld [vmem:[#allocation11 + $0x8] sm:$0xff]  }
  0xa3   :  { %355 = vmatpush1.bf16.msra.mxu0 %v1275_v45  ;;  %v410_v45 = vrot.slane %v405_v44, %v160_v18 }
  0xa4   :  { %356 = vmatprep.subr.bf16.mxu0 %v1276_v47  ;;  %602 = vmatpush1.bf16.msra.mxu1 %v1320_v61  ;;  %v1356_v61 = vld [vmem:[#allocation11 + $0x10] sm:$0xff]  }
  0xa5   :  { %603 = vmatprep.subr.bf16.mxu1 %v1321_v62  ;;  %v1357_v62 = vld [vmem:[#allocation11 + $0x18] sm:$0xff]  }
  0xa7   :  { %357 = vmatpush1.bf16.msra.mxu0 %v1278_v49 }
  0xa8   :  { %358 = vmatprep.subr.bf16.mxu0 %v1279_v51  ;;  %604 = vmatpush1.bf16.msra.mxu1 %v1323_v63  ;;  %v1358_v63 = vld [vmem:[#allocation11 + $0x20] sm:$0xff]  }
  0xa9   :  { %605 = vmatprep.subr.bf16.mxu1 %v1324_v0  ;;  %v1359_v0 = vld [vmem:[#allocation11 + $0x28] sm:$0xff]  }
  0xab   :  { %359 = vmatpush1.bf16.msra.mxu0 %v1281_v53 }
  0xac   :  { %606 = vmatpush1.bf16.msra.mxu1 %v1326_v1  ;;  %1141 = vmatprep.subr.bf16.mxu0 %v1330_v4 }
  0xad   :  { %607 = vmatprep.subr.bf16.mxu1 %v1327_v2  ;;  %v1106_v2 = vld [vmem:[%s1751_s6] ss:$0 sm:$0xff] }
  0xae   :  { %361 = vmatmul.mubr.bf16.vlgmr.msra.gmra.mrb[0].mxu0 %v122_v57  ;;  %v1352_v57 = vld [vmem:[#allocation10 + $0x30] sm:$0xff]  }
  0xaf   :  { %1142 = vmatpush3.bf16.msra.mxu0 %v1331_v5 }
  0xb0   :  { %608 = vmatpush1.bf16.msra.mxu1 %v1329_v3  ;;  %1143 = vmatprep.subr.bf16.mxu0 %v1332_v6 }
  0xb1   :  { %1181 = vmatprep.subr.bf16.mxu1 %v1536_v38 }
  0xb3   :  { %1144 = vmatpush3.bf16.msra.mxu0 %v1333_v7 }
  0xb4   :  { %1145 = vmatprep.subr.bf16.mxu0 %v1334_v8 }
  0xb7   :  { %1146 = vmatpush3.bf16.msra.mxu0 %v1335_v9 }
  0xb8   :  { %1147 = vmatprep.subr.bf16.mxu0 %v1336_v10  ;;  %v1360_v10 = vld [vmem:[#allocation11 + $0x30] sm:$0xff]  }
  0xbb   :  { %1148 = vmatpush3.bf16.msra.mxu0 %v1337_v11  ;;  %v1361_v11 = vld [vmem:[#allocation11 + $0x38] sm:$0xff]  }
  0xbc   :  { %1149 = vmatprep.subr.bf16.mxu0 %v1338_v12  ;;  %v1123_v12 = vld [vmem:[%s1753_s8] ss:$0 sm:$0xff]  ;;  %s1494_s8 = scalar_lea.vmem %s1031_s22, 128 }
  0xbd   :  { %p1495_p6 = scmp.ne.s32.totalorder %s1031_s22, %s1494_s8  ;;  %p1500_p8 = scmp.lt.s32.totalorder %s1494_s8, %s1494_s8 }
  0xbf   :  { %1150 = vmatpush3.bf16.msra.mxu0 %v1339_v13  ;;  %p1501_p9 = por %p1500_p8, %p1499_p7 }
  0xc0   :  { %1151 = vmatprep.subr.bf16.mxu0 %v1340_v14 }
  0xc1   :  { %p1502_p10 = pnand %p1501_p9, %p1495_p6 }
  0xc3   :  { %1152 = vmatpush3.bf16.msra.mxu0 %v1341_v15 }
  0xc4   :  { %1153 = vmatprep.subr.bf16.mxu0 %v1342_v33 }
  0xc7   :  { %1154 = vmatpush3.bf16.msra.mxu0 %v1343_v34 }
  0xc8   :  { %1155 = vmatprep.subr.bf16.mxu0 %v1344_v35 }
  0xcb   :  { %1156 = vmatpush3.bf16.msra.mxu0 %v1345_v36 }
  0xcc   :  { %1201 = vmatprep.subr.bf16.mxu0 %v1536_v38 }
 0x181   :  { %v362_v23 = vpop.f32.mrb[0].mxu0 }
 0x182   :  { %v363_v24 = vadd.f32 %v362_v23, %v161_v21  ;;  %v364_v25 = vpop.f32.mrb[1].mxu0 }
 0x183   :  { %v365_v26 = vadd.f32 %v364_v25, %v165_v22  ;;  %v366_v27 = vpop.f32.mrb[2].mxu0 }
 0x184   :  { %v369_v28 = vmax.f32 %v363_v24, 0.0  ;;  %v367_v29 = vpop.f32.mrb[3].mxu0 }
 0x185   :  { %v370_v30 = vmax.f32 %v365_v26, 0.0 }
 0x186   :  { %v371_v32 = vpack.c.bf16 %v369_v28, %v369_v28 }
 0x187   :  { %v372_v31 = vpack.c.bf16 %v370_v30, %v370_v30 }
 0x189   :  { %609 = vmatprep.mubr.bf16.mxu1 %v372_v31 }
 0x18a   :  { %610 = vmatmul.mubr.bf16.vlgmr.msra.gmra.mrb[0].mxu1 %v371_v32 }
 0x18b   :  { %1182 = vmatpush3.bf16.msra.mxu1 %v1346_v37  ;;  %1197 = vmatprep.mubr.msk.bf16.mxu1 %vm1537_vm0, %v1536_v38 }
 0x18c   :  { %1183 = vmatprep.subr.bf16.mxu1 %v1536_v38 }
 0x18f   :  { %1184 = vmatpush3.bf16.msra.mxu1 %v1347_v39 }
 0x190   :  { %1185 = vmatprep.subr.bf16.mxu1 %v1536_v38 }
 0x193   :  { %1186 = vmatpush3.bf16.msra.mxu1 %v1348_v40 }
 0x194   :  { %1187 = vmatprep.subr.bf16.mxu1 %v1536_v38 }
 0x197   :  { %1188 = vmatpush3.bf16.msra.mxu1 %v1349_v41 }
 0x198   :  { %1189 = vmatprep.subr.bf16.mxu1 %v1536_v38 }
 0x19b   :  { %1190 = vmatpush3.bf16.msra.mxu1 %v1350_v42 }
 0x19c   :  { %1191 = vmatprep.subr.bf16.mxu1 %v1536_v38 }
 0x19f   :  { %1192 = vmatpush3.bf16.msra.mxu1 %v1351_v43 }
 0x1a0   :  { %1193 = vmatprep.subr.bf16.mxu1 %v1536_v38 }
 0x1a3   :  { %1194 = vmatpush3.bf16.msra.mxu1 %v1352_v57 }
 0x1a4   :  { %1195 = vmatprep.subr.bf16.mxu1 %v1536_v38 }
 0x1a7   :  { %1196 = vmatpush3.bf16.msra.mxu1 %v1353_v58 }
 0x25d   :  { %v611_v47 = vpop.f32.mrb[0].mxu1 }
 0x25e   :  { %v612_v48 = vadd.f32 %v611_v47, %v410_v45  ;;  %v613_v49 = vpop.f32.mrb[1].mxu1 }
 0x25f   :  { %v614_v50 = vadd.f32 %v613_v49, %v414_v46  ;;  %v615_v51 = vpop.f32.mrb[2].mxu1 }
 0x260   :  { %v618_v52 = vmax.f32 %v612_v48, 0.0  ;;  %v616_v53 = vpop.f32.mrb[3].mxu1 }
 0x261   :  { %v619_v54 = vmax.f32 %v614_v50, 0.0 }
 0x262   :  { %v620_v56 = vpack.c.bf16 %v618_v52, %v618_v52 }
 0x263   :  { %v621_v55 = vpack.c.bf16 %v619_v54, %v619_v54 }
 0x265   :  { %789 = vmatprep.mubr.bf16.mxu0 %v621_v55 }
 0x266   :  { %790 = vmatmul.mubr.bf16.vlgmr.msra.gmra.mrb[4].mxu0 %v620_v56 }
 0x267   :  { %1217 = vmatprep.mubr.msk.bf16.mxu0 %vm1537_vm0, %v1536_v38  ;;  %1202 = vmatpush3.bf16.msra.mxu0 %v1354_v59 }
 0x268   :  { %1203 = vmatprep.subr.bf16.mxu0 %v1536_v38 }
 0x26b   :  { %1204 = vmatpush3.bf16.msra.mxu0 %v1355_v60 }
 0x26c   :  { %1205 = vmatprep.subr.bf16.mxu0 %v1536_v38 }
 0x26f   :  { %1206 = vmatpush3.bf16.msra.mxu0 %v1356_v61 }
 0x270   :  { %1207 = vmatprep.subr.bf16.mxu0 %v1536_v38 }
 0x273   :  { %1208 = vmatpush3.bf16.msra.mxu0 %v1357_v62 }
 0x274   :  { %1209 = vmatprep.subr.bf16.mxu0 %v1536_v38 }
 0x277   :  { %1210 = vmatpush3.bf16.msra.mxu0 %v1358_v63 }
 0x278   :  { %1211 = vmatprep.subr.bf16.mxu0 %v1536_v38 }
 0x27b   :  { %1212 = vmatpush3.bf16.msra.mxu0 %v1359_v0 }
 0x27c   :  { %1213 = vmatprep.subr.bf16.mxu0 %v1536_v38 }
 0x27f   :  { %1214 = vmatpush3.bf16.msra.mxu0 %v1360_v10 }
 0x280   :  { %1215 = vmatprep.subr.bf16.mxu0 %v1536_v38 }
 0x283   :  { %1216 = vmatpush3.bf16.msra.mxu0 %v1361_v11 }
 0x339   :  { %v1157_v1 = vpop.f32.mrb[4].mxu0 }
 0x33a   :  { %v1158_v3 = vpop.f32.mrb[5].mxu0 }
 0x33b   :  { %v1159_v4 = vadd.f32 %v1158_v3, %v1157_v1  ;;  %v1160_v5 = vpop.f32.mrb[6].mxu0 }
 0x33c   :  { %v1161_v6 = vpop.f32.mrb[7].mxu0 }
 0x33d   :  { %v792_v7 = vadd.f32 %v1159_v4, %v1106_v2 }
 0x33f   :  { %v797_v8 = vmax.f32 %v792_v7, 0.0 }
 0x341   :  { %v798_v9 = vpack.c.bf16 %v797_v8, %v797_v8 }
 0x343   :  { %1198 = vmatmul.mubr.bf16.vlgmr.msra.gmra.mrb[4].mxu1 %v798_v9 }
 0x416   :  { %v904_v13 = vpop.f32.mrb[4].mxu1 }
 0x417   :  { %v905_v14 = vadd.f32 %v1123_v12, %v904_v13  ;;  %v1199_v15 = vpop.f32.mrb[5].mxu1 }
 0x418   :  { %v907_v16 = vpop.f32.mrb[6].mxu1 }
 0x419   :  { %v910_v17 = vmax.f32 %v905_v14, 0.0  ;;  %v1200_v18 = vpop.f32.mrb[7].mxu1 }
 0x41b   :  { %v911_v19 = vpack.c.bf16 %v910_v17, %v910_v17 }
 0x41d   :  { %1218 = vmatmul.mubr.bf16.vlgmr.msra.gmra.mrb[8].mxu0 %v911_v19 }
 0x4f0   :  { %v1017_v21 = vpop.f32.mrb[8].mxu0 }
 0x4f1   :  { %v1018_v22 = vadd.f32 %v1132_v20, %v1017_v21  ;;  %v1219_v23 = vpop.f32.mrb[9].mxu0 }
 0x4f2   :  { %v1020_v24 = vpop.f32.mrb[10].mxu0 }
 0x4f3   :  { %1023 = vst [vmem:[#allocation13] sm:$0xff] %v1018_v22  ;;  %v1220_v25 = vpop.f32.mrb[11].mxu0 }
 0x4f4   :  { %1505 = shalt.err (!%p1502_p10)
}
 0x4f5   :  { %s1506_s10 = scalar_lea.hbm %s1756_s11, 128 }
 0x4f6   :  { %p1507_p11 = scmp.ne.s32.totalorder %s1756_s11, %s1506_s10  ;;  %p1510_p12 = scmp.lt.u32.totalorder %s1506_s10, %s1756_s11 }
 0x4f8   :  { %p1512_p13 = pnand %p1510_p12, %p1507_p11 }
 0x4fa   :  { %1515 = shalt.err (!%p1512_p13)
}
 0x4fb   :  { %1033 = dma.vmem_to_hbm [thread:$0]  %s1031_s22, 128, %s1756_s11, [#allocation4]  }
 0x4fc   :  { %1524 = dma.done.wait [#allocation4], 128  }
 0x4fd   :  { %1525 = vsyncadd [#allocation4], 4294967168 }
 0x4fe   :  { %1037 = vsyncpa [#allocation3], 1 }
 0x4ff   :  { %1038 = vsyncpa [#allocation6], 1 }
 0x500   :  { %1039 = vsyncpa [#allocation9], 1 }
 0x501   :  { %1040 = vsyncpa [#allocation12], 1 }
 0x502   :  { %1041 = vsyncpa [#allocation4], 1 }

</bundles_post_ra>
